<compile_context>
chip_gen: v5e
topology: v5e:2x2
jax: 0.10.0
libtpu: 0.0.40
codegen_flags: <defaults>
</compile_context>

<pallas_src>
import functools

import jax
import jax.numpy as jnp
from jax.experimental import pallas as pl
from jax.experimental.pallas import tpu as pltpu


# ----------------------------------------------------------------------------
# Host-side helpers
# ----------------------------------------------------------------------------
def _make_tap_masks(H, W, dtype=jnp.float32):
    """(9, H*W) validity masks for the 3x3 taps (emulates zero padding)."""
    h = jnp.arange(H)[:, None]
    w = jnp.arange(W)[None, :]
    rows = []
    for dy in (-1, 0, 1):
        for dx in (-1, 0, 1):
            valid = ((h + dy >= 0) & (h + dy < H) &
                     (w + dx >= 0) & (w + dx < W))
            rows.append(valid.reshape(-1))
    return jnp.stack(rows, axis=0).astype(dtype)


def _w3x3_to_mat(w):
    """Torch-layout (Cout, Cin, 3, 3) conv weight -> (Cout, 9*Cin) matmul weight.

    Column ordering is (ky*3 + kx)*Cin + ci, matching the in-kernel patch.
    """
    ci, co = w.shape[1], w.shape[0]
    return jnp.transpose(w, (2, 3, 1, 0)).reshape(9 * ci, co).T


# ----------------------------------------------------------------------------
# Fused kernel: conv3x3+BN+ReLU -> conv3x3+BN+ReLU -> conv1x1+bias
# ----------------------------------------------------------------------------
def _conv_ffn_kernel(img_w,
                     x_ref, mask_ref,
                     w1_ref, s1_ref, t1_ref,
                     w2_ref, s2_ref, t2_ref,
                     w3_ref, b3_ref,
                     o_ref):
    # x_ref:    (1, Cin, HW)  flat NCHW activation for one batch element
    # mask_ref: (9, HW)       per-tap validity mask (zero-padding emulation)
    # w1_ref:   (mid, 9*Cin)  s1/t1: (mid, 1) folded BN scale/shift
    # w2_ref:   (mid, 9*mid)  s2/t2: (mid, 1)
    # w3_ref:   (out, mid)    b3:    (out, 1)
    # o_ref:    (1, out, HW)
    mask = mask_ref[...]                       # (9, HW)
    x = x_ref[0]                               # (Cin, HW)
    cdt = x.dtype

    def shifted(v, s):
        # y[:, p] == v[:, (p + s) mod HW]; wrapped lanes are masked out below.
        if s == 0:
            return v
        return jnp.concatenate([v[:, s:], v[:, :s]], axis=1)

    def conv3x3_bn_relu(v, w_mat, scale, shift):
        pieces = []
        t = 0
        for dy in (-1, 0, 1):
            for dx in (-1, 0, 1):
                m = mask[t:t + 1, :].astype(v.dtype)          # (1, HW)
                pieces.append(shifted(v, dy * img_w + dx) * m)
                t += 1
        patch = jnp.concatenate(pieces, axis=0)               # (9*C, HW)
        acc = jnp.dot(w_mat, patch,
                      preferred_element_type=jnp.float32)     # (Cout, HW)
        # Inference BatchNorm (folded) + ReLU, in f32.
        return jnp.maximum(acc * scale + shift, 0.0)

    h1 = conv3x3_bn_relu(x, w1_ref[...], s1_ref[...], t1_ref[...])
    h2 = conv3x3_bn_relu(h1.astype(cdt), w2_ref[...], s2_ref[...], t2_ref[...])
    y = jnp.dot(w3_ref[...], h2.astype(cdt),
                preferred_element_type=jnp.float32) + b3_ref[...]
    o_ref[0] = y.astype(o_ref.dtype)


def conv_ffn_forward(x, p, *, compute_dtype=jnp.float32):
    """x: (N, C, H, W) float32 (PyTorch NCHW). Returns (N, out_dim, H, W)."""
    N, cin, H, W = x.shape
    mid = p["w1"].shape[0]
    out_dim = p["w3"].shape[0]
    hw = H * W

    # Free reshape: flatten spatial dims onto the (lane-dense) minor axis.
    x_flat = x.reshape(N, cin, hw).astype(compute_dtype)
    mask = _make_tap_masks(H, W, dtype=compute_dtype)

    w1m = _w3x3_to_mat(p["w1"]).astype(compute_dtype)           # (mid, 9*cin)
    w2m = _w3x3_to_mat(p["w2"]).astype(compute_dtype)           # (mid, 9*mid)
    w3m = p["w3"].reshape(out_dim, mid).astype(compute_dtype)   # (out, mid)

    s1 = p["scale1"].reshape(mid, 1).astype(jnp.float32)
    t1 = p["shift1"].reshape(mid, 1).astype(jnp.float32)
    s2 = p["scale2"].reshape(mid, 1).astype(jnp.float32)
    t2 = p["shift2"].reshape(mid, 1).astype(jnp.float32)
    b3 = p["b3"].reshape(out_dim, 1).astype(jnp.float32)

    kernel = functools.partial(_conv_ffn_kernel, W)

    out_flat = pl.pallas_call(
        kernel,
        out_shape=jax.ShapeDtypeStruct((N, out_dim, hw), jnp.float32),
        grid=(N,),
        in_specs=[
            pl.BlockSpec((1, cin, hw), lambda n: (n, 0, 0)),
            pl.BlockSpec((9, hw), lambda n: (0, 0)),
            pl.BlockSpec((mid, 9 * cin), lambda n: (0, 0)),
            pl.BlockSpec((mid, 1), lambda n: (0, 0)),
            pl.BlockSpec((mid, 1), lambda n: (0, 0)),
            pl.BlockSpec((mid, 9 * mid), lambda n: (0, 0)),
            pl.BlockSpec((mid, 1), lambda n: (0, 0)),
            pl.BlockSpec((mid, 1), lambda n: (0, 0)),
            pl.BlockSpec((out_dim, mid), lambda n: (0, 0)),
            pl.BlockSpec((out_dim, 1), lambda n: (0, 0)),
        ],
        out_specs=pl.BlockSpec((1, out_dim, hw), lambda n: (n, 0, 0)),
        compiler_params=pltpu.CompilerParams(
            dimension_semantics=("parallel",)),
    )(x_flat, mask, w1m, s1, t1, w2m, s2, t2, w3m, b3)

    return out_flat.reshape(N, out_dim, H, W)


# ----------------------------------------------------------------------------
# Pure-JAX reference (mirrors the PyTorch module, BN in eval mode) + params
# ----------------------------------------------------------------------------
def conv_ffn_reference(x, p):
    dn = ("NCHW", "OIHW", "NCHW")
    y = jax.lax.conv_general_dilated(x, p["w1"], (1, 1), ((1, 1), (1, 1)),
                                     dimension_numbers=dn)
    y = jnp.maximum(y * p["scale1"][None, :, None, None]
                    + p["shift1"][None, :, None, None], 0.0)
    y = jax.lax.conv_general_dilated(y, p["w2"], (1, 1), ((1, 1), (1, 1)),
                                     dimension_numbers=dn)
    y = jnp.maximum(y * p["scale2"][None, :, None, None]
                    + p["shift2"][None, :, None, None], 0.0)
    y = jax.lax.conv_general_dilated(y, p["w3"], (1, 1), ((0, 0), (0, 0)),
                                     dimension_numbers=dn)
    return y + p["b3"][None, :, None, None]


def make_params(key, dim=4, ffn_expand=4, out_dim=None):
    if out_dim is None:
        out_dim = dim
    mid = dim * ffn_expand
    eps = 1e-5
    ks = jax.random.split(key, 12)

    def bn_fold(kg, kb, km, kv, c):
        gamma = 1.0 + 0.1 * jax.random.normal(kg, (c,), jnp.float32)
        beta = 0.1 * jax.random.normal(kb, (c,), jnp.float32)
        mean = 0.1 * jax.random.normal(km, (c,), jnp.float32)
        var = jax.random.uniform(kv, (c,), jnp.float32, minval=0.5, maxval=1.5)
        scale = gamma / jnp.sqrt(var + eps)
        shift = beta - mean * scale
        return scale, shift

    scale1, shift1 = bn_fold(ks[1], ks[2], ks[3], ks[4], mid)
    scale2, shift2 = bn_fold(ks[6], ks[7], ks[8], ks[9], mid)
    return {
        "w1": 0.1 * jax.random.normal(ks[0], (mid, dim, 3, 3), jnp.float32),
        "scale1": scale1, "shift1": shift1,
        "w2": 0.1 * jax.random.normal(ks[5], (mid, mid, 3, 3), jnp.float32),
        "scale2": scale2, "shift2": shift2,
        "w3": 0.1 * jax.random.normal(ks[10], (out_dim, mid, 1, 1), jnp.float32),
        "b3": 0.1 * jax.random.normal(ks[11], (out_dim,), jnp.float32),
    }


if __name__ == "__main__":
    key = jax.random.PRNGKey(0)
    k_x, k_p = jax.random.split(key)

    dim, ffn_expand = 4, 4
    N, H, W = 2, 16, 16
    x = jax.random.normal(k_x, (N, dim, H, W), jnp.float32)   # NCHW, like PyTorch
    params = make_params(k_p, dim=dim, ffn_expand=ffn_expand)

    out = jax.block_until_ready(jax.jit(conv_ffn_forward)(x, params))
    ref = jax.block_until_ready(conv_ffn_reference(x, params))

    assert out.shape == (N, dim, H, W), out.shape
    max_err = float(jnp.max(jnp.abs(out - ref)))
    assert jnp.allclose(out, ref, atol=1e-3, rtol=1e-3), max_err
    print("KERNEL_OK")
</pallas_src>

<mosaic_0001>
module attributes {stable_mosaic.version = 11 : i64} {
  func.func @_conv_ffn_kernel(%arg0: i32, %arg1: memref<1x4x256xf32, #tpu.memory_space<vmem>>, %arg2: memref<9x256xf32, #tpu.memory_space<vmem>>, %arg3: memref<16x36xf32, #tpu.memory_space<vmem>>, %arg4: memref<16x1xf32, #tpu.memory_space<vmem>>, %arg5: memref<16x1xf32, #tpu.memory_space<vmem>>, %arg6: memref<16x144xf32, #tpu.memory_space<vmem>>, %arg7: memref<16x1xf32, #tpu.memory_space<vmem>>, %arg8: memref<16x1xf32, #tpu.memory_space<vmem>>, %arg9: memref<4x16xf32, #tpu.memory_space<vmem>>, %arg10: memref<4x1xf32, #tpu.memory_space<vmem>>, %arg11: memref<1x4x256xf32, #tpu.memory_space<vmem>>) attributes {dimension_semantics = [#tpu.dimension_semantics<parallel>], iteration_bounds = array<i64: 2>, scalar_prefetch = 0 : i64, scratch_operands = 0 : i64, tpu.core_type = #tpu.core_type<tc>, window_params = [{transform_indices = @transform_0, window_bounds = array<i64: 1, 4, 256>}, {pipeline_mode = #tpu.pipeline_mode<synchronous>, transform_indices = @transform_1, window_bounds = array<i64: 9, 256>}, {pipeline_mode = #tpu.pipeline_mode<synchronous>, transform_indices = @transform_2, window_bounds = array<i64: 16, 36>}, {pipeline_mode = #tpu.pipeline_mode<synchronous>, transform_indices = @transform_3, window_bounds = array<i64: 16, 1>}, {pipeline_mode = #tpu.pipeline_mode<synchronous>, transform_indices = @transform_4, window_bounds = array<i64: 16, 1>}, {pipeline_mode = #tpu.pipeline_mode<synchronous>, transform_indices = @transform_5, window_bounds = array<i64: 16, 144>}, {pipeline_mode = #tpu.pipeline_mode<synchronous>, transform_indices = @transform_6, window_bounds = array<i64: 16, 1>}, {pipeline_mode = #tpu.pipeline_mode<synchronous>, transform_indices = @transform_7, window_bounds = array<i64: 16, 1>}, {pipeline_mode = #tpu.pipeline_mode<synchronous>, transform_indices = @transform_8, window_bounds = array<i64: 4, 16>}, {pipeline_mode = #tpu.pipeline_mode<synchronous>, transform_indices = @transform_9, window_bounds = array<i64: 4, 1>}, {transform_indices = @transform_10, window_bounds = array<i64: 1, 4, 256>}]} {
    %c0 = arith.constant 0 : index
    %c0_0 = arith.constant 0 : index
    %0 = vector.load %arg2[%c0, %c0_0] : memref<9x256xf32, #tpu.memory_space<vmem>>, vector<9x256xf32>
    %c0_1 = arith.constant 0 : index
    %c0_2 = arith.constant 0 : index
    %c0_3 = arith.constant 0 : index
    %1 = vector.load %arg1[%c0_1, %c0_2, %c0_3] : memref<1x4x256xf32, #tpu.memory_space<vmem>>, vector<1x4x256xf32>
    %2 = vector.shape_cast %1 : vector<1x4x256xf32> to vector<4x256xf32>
    %c0_4 = arith.constant 0 : index
    %c0_5 = arith.constant 0 : index
    %3 = vector.load %arg3[%c0_4, %c0_5] : memref<16x36xf32, #tpu.memory_space<vmem>>, vector<16x36xf32>
    %c0_6 = arith.constant 0 : index
    %c0_7 = arith.constant 0 : index
    %4 = vector.load %arg4[%c0_6, %c0_7] : memref<16x1xf32, #tpu.memory_space<vmem>>, vector<16x1xf32>
    %c0_8 = arith.constant 0 : index
    %c0_9 = arith.constant 0 : index
    %5 = vector.load %arg5[%c0_8, %c0_9] : memref<16x1xf32, #tpu.memory_space<vmem>>, vector<16x1xf32>
    %6 = vector.extract_strided_slice %0 {offsets = [0, 0], sizes = [1, 256], strides = [1, 1]} : vector<9x256xf32> to vector<1x256xf32>
    %7 = vector.extract_strided_slice %2 {offsets = [0, 239], sizes = [4, 17], strides = [1, 1]} : vector<4x256xf32> to vector<4x17xf32>
    %8 = vector.extract_strided_slice %2 {offsets = [0, 0], sizes = [4, 239], strides = [1, 1]} : vector<4x256xf32> to vector<4x239xf32>
    %9 = tpu.concatenate %7, %8 in 1 : vector<4x17xf32>, vector<4x239xf32> -> vector<4x256xf32>
    %10 = vector.broadcast %6 : vector<1x256xf32> to vector<4x256xf32>
    %11 = arith.mulf %9, %10 : vector<4x256xf32>
    %12 = vector.extract_strided_slice %0 {offsets = [1, 0], sizes = [1, 256], strides = [1, 1]} : vector<9x256xf32> to vector<1x256xf32>
    %13 = vector.extract_strided_slice %2 {offsets = [0, 240], sizes = [4, 16], strides = [1, 1]} : vector<4x256xf32> to vector<4x16xf32>
    %14 = vector.extract_strided_slice %2 {offsets = [0, 0], sizes = [4, 240], strides = [1, 1]} : vector<4x256xf32> to vector<4x240xf32>
    %15 = tpu.concatenate %13, %14 in 1 : vector<4x16xf32>, vector<4x240xf32> -> vector<4x256xf32>
    %16 = vector.broadcast %12 : vector<1x256xf32> to vector<4x256xf32>
    %17 = arith.mulf %15, %16 : vector<4x256xf32>
    %18 = vector.extract_strided_slice %0 {offsets = [2, 0], sizes = [1, 256], strides = [1, 1]} : vector<9x256xf32> to vector<1x256xf32>
    %19 = vector.extract_strided_slice %2 {offsets = [0, 241], sizes = [4, 15], strides = [1, 1]} : vector<4x256xf32> to vector<4x15xf32>
    %20 = vector.extract_strided_slice %2 {offsets = [0, 0], sizes = [4, 241], strides = [1, 1]} : vector<4x256xf32> to vector<4x241xf32>
    %21 = tpu.concatenate %19, %20 in 1 : vector<4x15xf32>, vector<4x241xf32> -> vector<4x256xf32>
    %22 = vector.broadcast %18 : vector<1x256xf32> to vector<4x256xf32>
    %23 = arith.mulf %21, %22 : vector<4x256xf32>
    %24 = vector.extract_strided_slice %0 {offsets = [3, 0], sizes = [1, 256], strides = [1, 1]} : vector<9x256xf32> to vector<1x256xf32>
    %25 = vector.extract_strided_slice %2 {offsets = [0, 255], sizes = [4, 1], strides = [1, 1]} : vector<4x256xf32> to vector<4x1xf32>
    %26 = vector.extract_strided_slice %2 {offsets = [0, 0], sizes = [4, 255], strides = [1, 1]} : vector<4x256xf32> to vector<4x255xf32>
    %27 = tpu.concatenate %25, %26 in 1 : vector<4x1xf32>, vector<4x255xf32> -> vector<4x256xf32>
    %28 = vector.broadcast %24 : vector<1x256xf32> to vector<4x256xf32>
    %29 = arith.mulf %27, %28 : vector<4x256xf32>
    %30 = vector.extract_strided_slice %0 {offsets = [4, 0], sizes = [1, 256], strides = [1, 1]} : vector<9x256xf32> to vector<1x256xf32>
    %31 = vector.broadcast %30 : vector<1x256xf32> to vector<4x256xf32>
    %32 = arith.mulf %2, %31 : vector<4x256xf32>
    %33 = vector.extract_strided_slice %0 {offsets = [5, 0], sizes = [1, 256], strides = [1, 1]} : vector<9x256xf32> to vector<1x256xf32>
    %34 = vector.extract_strided_slice %2 {offsets = [0, 1], sizes = [4, 255], strides = [1, 1]} : vector<4x256xf32> to vector<4x255xf32>
    %35 = vector.extract_strided_slice %2 {offsets = [0, 0], sizes = [4, 1], strides = [1, 1]} : vector<4x256xf32> to vector<4x1xf32>
    %36 = tpu.concatenate %34, %35 in 1 : vector<4x255xf32>, vector<4x1xf32> -> vector<4x256xf32>
    %37 = vector.broadcast %33 : vector<1x256xf32> to vector<4x256xf32>
    %38 = arith.mulf %36, %37 : vector<4x256xf32>
    %39 = vector.extract_strided_slice %0 {offsets = [6, 0], sizes = [1, 256], strides = [1, 1]} : vector<9x256xf32> to vector<1x256xf32>
    %40 = vector.extract_strided_slice %2 {offsets = [0, 15], sizes = [4, 241], strides = [1, 1]} : vector<4x256xf32> to vector<4x241xf32>
    %41 = vector.extract_strided_slice %2 {offsets = [0, 0], sizes = [4, 15], strides = [1, 1]} : vector<4x256xf32> to vector<4x15xf32>
    %42 = tpu.concatenate %40, %41 in 1 : vector<4x241xf32>, vector<4x15xf32> -> vector<4x256xf32>
    %43 = vector.broadcast %39 : vector<1x256xf32> to vector<4x256xf32>
    %44 = arith.mulf %42, %43 : vector<4x256xf32>
    %45 = vector.extract_strided_slice %0 {offsets = [7, 0], sizes = [1, 256], strides = [1, 1]} : vector<9x256xf32> to vector<1x256xf32>
    %46 = vector.extract_strided_slice %2 {offsets = [0, 16], sizes = [4, 240], strides = [1, 1]} : vector<4x256xf32> to vector<4x240xf32>
    %47 = vector.extract_strided_slice %2 {offsets = [0, 0], sizes = [4, 16], strides = [1, 1]} : vector<4x256xf32> to vector<4x16xf32>
    %48 = tpu.concatenate %46, %47 in 1 : vector<4x240xf32>, vector<4x16xf32> -> vector<4x256xf32>
    %49 = vector.broadcast %45 : vector<1x256xf32> to vector<4x256xf32>
    %50 = arith.mulf %48, %49 : vector<4x256xf32>
    %51 = vector.extract_strided_slice %0 {offsets = [8, 0], sizes = [1, 256], strides = [1, 1]} : vector<9x256xf32> to vector<1x256xf32>
    %52 = vector.extract_strided_slice %2 {offsets = [0, 17], sizes = [4, 239], strides = [1, 1]} : vector<4x256xf32> to vector<4x239xf32>
    %53 = vector.extract_strided_slice %2 {offsets = [0, 0], sizes = [4, 17], strides = [1, 1]} : vector<4x256xf32> to vector<4x17xf32>
    %54 = tpu.concatenate %52, %53 in 1 : vector<4x239xf32>, vector<4x17xf32> -> vector<4x256xf32>
    %55 = vector.broadcast %51 : vector<1x256xf32> to vector<4x256xf32>
    %56 = arith.mulf %54, %55 : vector<4x256xf32>
    %57 = tpu.concatenate %11, %17, %23, %29, %32, %38, %44, %50, %56 in 0 : vector<4x256xf32>, vector<4x256xf32>, vector<4x256xf32>, vector<4x256xf32>, vector<4x256xf32>, vector<4x256xf32>, vector<4x256xf32>, vector<4x256xf32>, vector<4x256xf32> -> vector<36x256xf32>
    %cst = arith.constant dense<0.000000e+00> : vector<16x256xf32>
    %58 = tpu.matmul %3, %57, %cst {dimension_numbers = #tpu.dot_dimension_numbers<[1], [0], [0], [1], [0, 0, 1, 1], [], []>} : vector<16x36xf32>, vector<36x256xf32>, vector<16x256xf32> -> vector<16x256xf32>
    %59 = vector.broadcast %4 : vector<16x1xf32> to vector<16x256xf32>
    %60 = arith.mulf %58, %59 : vector<16x256xf32>
    %61 = vector.broadcast %5 : vector<16x1xf32> to vector<16x256xf32>
    %62 = arith.addf %60, %61 : vector<16x256xf32>
    %cst_10 = arith.constant 0.000000e+00 : f32
    %63 = vector.broadcast %cst_10 : f32 to vector<16x256xf32>
    %64 = arith.maximumf %62, %63 : vector<16x256xf32>
    %c0_11 = arith.constant 0 : index
    %c0_12 = arith.constant 0 : index
    %65 = vector.load %arg6[%c0_11, %c0_12] : memref<16x144xf32, #tpu.memory_space<vmem>>, vector<16x144xf32>
    %c0_13 = arith.constant 0 : index
    %c0_14 = arith.constant 0 : index
    %66 = vector.load %arg7[%c0_13, %c0_14] : memref<16x1xf32, #tpu.memory_space<vmem>>, vector<16x1xf32>
    %c0_15 = arith.constant 0 : index
    %c0_16 = arith.constant 0 : index
    %67 = vector.load %arg8[%c0_15, %c0_16] : memref<16x1xf32, #tpu.memory_space<vmem>>, vector<16x1xf32>
    %68 = vector.extract_strided_slice %0 {offsets = [0, 0], sizes = [1, 256], strides = [1, 1]} : vector<9x256xf32> to vector<1x256xf32>
    %69 = vector.extract_strided_slice %64 {offsets = [0, 239], sizes = [16, 17], strides = [1, 1]} : vector<16x256xf32> to vector<16x17xf32>
    %70 = vector.extract_strided_slice %64 {offsets = [0, 0], sizes = [16, 239], strides = [1, 1]} : vector<16x256xf32> to vector<16x239xf32>
    %71 = tpu.concatenate %69, %70 in 1 : vector<16x17xf32>, vector<16x239xf32> -> vector<16x256xf32>
    %72 = vector.broadcast %68 : vector<1x256xf32> to vector<16x256xf32>
    %73 = arith.mulf %71, %72 : vector<16x256xf32>
    %74 = vector.extract_strided_slice %0 {offsets = [1, 0], sizes = [1, 256], strides = [1, 1]} : vector<9x256xf32> to vector<1x256xf32>
    %75 = vector.extract_strided_slice %64 {offsets = [0, 240], sizes = [16, 16], strides = [1, 1]} : vector<16x256xf32> to vector<16x16xf32>
    %76 = vector.extract_strided_slice %64 {offsets = [0, 0], sizes = [16, 240], strides = [1, 1]} : vector<16x256xf32> to vector<16x240xf32>
    %77 = tpu.concatenate %75, %76 in 1 : vector<16x16xf32>, vector<16x240xf32> -> vector<16x256xf32>
    %78 = vector.broadcast %74 : vector<1x256xf32> to vector<16x256xf32>
    %79 = arith.mulf %77, %78 : vector<16x256xf32>
    %80 = vector.extract_strided_slice %0 {offsets = [2, 0], sizes = [1, 256], strides = [1, 1]} : vector<9x256xf32> to vector<1x256xf32>
    %81 = vector.extract_strided_slice %64 {offsets = [0, 241], sizes = [16, 15], strides = [1, 1]} : vector<16x256xf32> to vector<16x15xf32>
    %82 = vector.extract_strided_slice %64 {offsets = [0, 0], sizes = [16, 241], strides = [1, 1]} : vector<16x256xf32> to vector<16x241xf32>
    %83 = tpu.concatenate %81, %82 in 1 : vector<16x15xf32>, vector<16x241xf32> -> vector<16x256xf32>
    %84 = vector.broadcast %80 : vector<1x256xf32> to vector<16x256xf32>
    %85 = arith.mulf %83, %84 : vector<16x256xf32>
    %86 = vector.extract_strided_slice %0 {offsets = [3, 0], sizes = [1, 256], strides = [1, 1]} : vector<9x256xf32> to vector<1x256xf32>
    %87 = vector.extract_strided_slice %64 {offsets = [0, 255], sizes = [16, 1], strides = [1, 1]} : vector<16x256xf32> to vector<16x1xf32>
    %88 = vector.extract_strided_slice %64 {offsets = [0, 0], sizes = [16, 255], strides = [1, 1]} : vector<16x256xf32> to vector<16x255xf32>
    %89 = tpu.concatenate %87, %88 in 1 : vector<16x1xf32>, vector<16x255xf32> -> vector<16x256xf32>
    %90 = vector.broadcast %86 : vector<1x256xf32> to vector<16x256xf32>
    %91 = arith.mulf %89, %90 : vector<16x256xf32>
    %92 = vector.extract_strided_slice %0 {offsets = [4, 0], sizes = [1, 256], strides = [1, 1]} : vector<9x256xf32> to vector<1x256xf32>
    %93 = vector.broadcast %92 : vector<1x256xf32> to vector<16x256xf32>
    %94 = arith.mulf %64, %93 : vector<16x256xf32>
    %95 = vector.extract_strided_slice %0 {offsets = [5, 0], sizes = [1, 256], strides = [1, 1]} : vector<9x256xf32> to vector<1x256xf32>
    %96 = vector.extract_strided_slice %64 {offsets = [0, 1], sizes = [16, 255], strides = [1, 1]} : vector<16x256xf32> to vector<16x255xf32>
    %97 = vector.extract_strided_slice %64 {offsets = [0, 0], sizes = [16, 1], strides = [1, 1]} : vector<16x256xf32> to vector<16x1xf32>
    %98 = tpu.concatenate %96, %97 in 1 : vector<16x255xf32>, vector<16x1xf32> -> vector<16x256xf32>
    %99 = vector.broadcast %95 : vector<1x256xf32> to vector<16x256xf32>
    %100 = arith.mulf %98, %99 : vector<16x256xf32>
    %101 = vector.extract_strided_slice %0 {offsets = [6, 0], sizes = [1, 256], strides = [1, 1]} : vector<9x256xf32> to vector<1x256xf32>
    %102 = vector.extract_strided_slice %64 {offsets = [0, 15], sizes = [16, 241], strides = [1, 1]} : vector<16x256xf32> to vector<16x241xf32>
    %103 = vector.extract_strided_slice %64 {offsets = [0, 0], sizes = [16, 15], strides = [1, 1]} : vector<16x256xf32> to vector<16x15xf32>
    %104 = tpu.concatenate %102, %103 in 1 : vector<16x241xf32>, vector<16x15xf32> -> vector<16x256xf32>
    %105 = vector.broadcast %101 : vector<1x256xf32> to vector<16x256xf32>
    %106 = arith.mulf %104, %105 : vector<16x256xf32>
    %107 = vector.extract_strided_slice %0 {offsets = [7, 0], sizes = [1, 256], strides = [1, 1]} : vector<9x256xf32> to vector<1x256xf32>
    %108 = vector.extract_strided_slice %64 {offsets = [0, 16], sizes = [16, 240], strides = [1, 1]} : vector<16x256xf32> to vector<16x240xf32>
    %109 = vector.extract_strided_slice %64 {offsets = [0, 0], sizes = [16, 16], strides = [1, 1]} : vector<16x256xf32> to vector<16x16xf32>
    %110 = tpu.concatenate %108, %109 in 1 : vector<16x240xf32>, vector<16x16xf32> -> vector<16x256xf32>
    %111 = vector.broadcast %107 : vector<1x256xf32> to vector<16x256xf32>
    %112 = arith.mulf %110, %111 : vector<16x256xf32>
    %113 = vector.extract_strided_slice %0 {offsets = [8, 0], sizes = [1, 256], strides = [1, 1]} : vector<9x256xf32> to vector<1x256xf32>
    %114 = vector.extract_strided_slice %64 {offsets = [0, 17], sizes = [16, 239], strides = [1, 1]} : vector<16x256xf32> to vector<16x239xf32>
    %115 = vector.extract_strided_slice %64 {offsets = [0, 0], sizes = [16, 17], strides = [1, 1]} : vector<16x256xf32> to vector<16x17xf32>
    %116 = tpu.concatenate %114, %115 in 1 : vector<16x239xf32>, vector<16x17xf32> -> vector<16x256xf32>
    %117 = vector.broadcast %113 : vector<1x256xf32> to vector<16x256xf32>
    %118 = arith.mulf %116, %117 : vector<16x256xf32>
    %119 = tpu.concatenate %73, %79, %85, %91, %94, %100, %106, %112, %118 in 0 : vector<16x256xf32>, vector<16x256xf32>, vector<16x256xf32>, vector<16x256xf32>, vector<16x256xf32>, vector<16x256xf32>, vector<16x256xf32>, vector<16x256xf32>, vector<16x256xf32> -> vector<144x256xf32>
    %cst_17 = arith.constant dense<0.000000e+00> : vector<16x256xf32>
    %120 = tpu.matmul %65, %119, %cst_17 {dimension_numbers = #tpu.dot_dimension_numbers<[1], [0], [0], [1], [0, 0, 1, 1], [], []>} : vector<16x144xf32>, vector<144x256xf32>, vector<16x256xf32> -> vector<16x256xf32>
    %121 = vector.broadcast %66 : vector<16x1xf32> to vector<16x256xf32>
    %122 = arith.mulf %120, %121 : vector<16x256xf32>
    %123 = vector.broadcast %67 : vector<16x1xf32> to vector<16x256xf32>
    %124 = arith.addf %122, %123 : vector<16x256xf32>
    %cst_18 = arith.constant 0.000000e+00 : f32
    %125 = vector.broadcast %cst_18 : f32 to vector<16x256xf32>
    %126 = arith.maximumf %124, %125 : vector<16x256xf32>
    %c0_19 = arith.constant 0 : index
    %c0_20 = arith.constant 0 : index
    %127 = vector.load %arg9[%c0_19, %c0_20] : memref<4x16xf32, #tpu.memory_space<vmem>>, vector<4x16xf32>
    %cst_21 = arith.constant dense<0.000000e+00> : vector<4x256xf32>
    %128 = tpu.matmul %127, %126, %cst_21 {dimension_numbers = #tpu.dot_dimension_numbers<[1], [0], [0], [1], [0, 0, 1, 1], [], []>} : vector<4x16xf32>, vector<16x256xf32>, vector<4x256xf32> -> vector<4x256xf32>
    %c0_22 = arith.constant 0 : index
    %c0_23 = arith.constant 0 : index
    %129 = vector.load %arg10[%c0_22, %c0_23] : memref<4x1xf32, #tpu.memory_space<vmem>>, vector<4x1xf32>
    %130 = vector.broadcast %129 : vector<4x1xf32> to vector<4x256xf32>
    %131 = arith.addf %128, %130 : vector<4x256xf32>
    %c0_24 = arith.constant 0 : index
    %c0_25 = arith.constant 0 : index
    %c0_26 = arith.constant 0 : index
    %132 = vector.load %arg11[%c0_24, %c0_25, %c0_26] : memref<1x4x256xf32, #tpu.memory_space<vmem>>, vector<1x4x256xf32>
    %133 = vector.shape_cast %132 : vector<1x4x256xf32> to vector<4x256xf32>
    %134 = vector.shape_cast %131 : vector<4x256xf32> to vector<1x4x256xf32>
    tpu.vector_store %arg11[%c0_24, %c0_25, %c0_26], %134 {strides = array<i32>} : memref<1x4x256xf32, #tpu.memory_space<vmem>>, vector<1x4x256xf32>,
    return
  }
  func.func @transform_0(%arg0: i32) -> (i32, i32, i32) {
    %c0_i32 = arith.constant 0 : i32
    %c0_i32_0 = arith.constant 0 : i32
    %c0_i32_1 = arith.constant 0 : i32
    return %arg0, %c0_i32, %c0_i32_0 : i32, i32, i32
  }
  func.func @transform_1(%arg0: i32) -> (i32, i32) {
    %c0_i32 = arith.constant 0 : i32
    %c0_i32_0 = arith.constant 0 : i32
    %c0_i32_1 = arith.constant 0 : i32
    return %c0_i32, %c0_i32_0 : i32, i32
  }
  func.func @transform_2(%arg0: i32) -> (i32, i32) {
    %c0_i32 = arith.constant 0 : i32
    %c0_i32_0 = arith.constant 0 : i32
    %c0_i32_1 = arith.constant 0 : i32
    return %c0_i32, %c0_i32_0 : i32, i32
  }
  func.func @transform_3(%arg0: i32) -> (i32, i32) {
    %c0_i32 = arith.constant 0 : i32
    %c0_i32_0 = arith.constant 0 : i32
    %c0_i32_1 = arith.constant 0 : i32
    return %c0_i32, %c0_i32_0 : i32, i32
  }
  func.func @transform_4(%arg0: i32) -> (i32, i32) {
    %c0_i32 = arith.constant 0 : i32
    %c0_i32_0 = arith.constant 0 : i32
    %c0_i32_1 = arith.constant 0 : i32
    return %c0_i32, %c0_i32_0 : i32, i32
  }
  func.func @transform_5(%arg0: i32) -> (i32, i32) {
    %c0_i32 = arith.constant 0 : i32
    %c0_i32_0 = arith.constant 0 : i32
    %c0_i32_1 = arith.constant 0 : i32
    return %c0_i32, %c0_i32_0 : i32, i32
  }
  func.func @transform_6(%arg0: i32) -> (i32, i32) {
    %c0_i32 = arith.constant 0 : i32
    %c0_i32_0 = arith.constant 0 : i32
    %c0_i32_1 = arith.constant 0 : i32
    return %c0_i32, %c0_i32_0 : i32, i32
  }
  func.func @transform_7(%arg0: i32) -> (i32, i32) {
    %c0_i32 = arith.constant 0 : i32
    %c0_i32_0 = arith.constant 0 : i32
    %c0_i32_1 = arith.constant 0 : i32
    return %c0_i32, %c0_i32_0 : i32, i32
  }
  func.func @transform_8(%arg0: i32) -> (i32, i32) {
    %c0_i32 = arith.constant 0 : i32
    %c0_i32_0 = arith.constant 0 : i32
    %c0_i32_1 = arith.constant 0 : i32
    return %c0_i32, %c0_i32_0 : i32, i32
  }
  func.func @transform_9(%arg0: i32) -> (i32, i32) {
    %c0_i32 = arith.constant 0 : i32
    %c0_i32_0 = arith.constant 0 : i32
    %c0_i32_1 = arith.constant 0 : i32
    return %c0_i32, %c0_i32_0 : i32, i32
  }
  func.func @transform_10(%arg0: i32) -> (i32, i32, i32) {
    %c0_i32 = arith.constant 0 : i32
    %c0_i32_0 = arith.constant 0 : i32
    %c0_i32_1 = arith.constant 0 : i32
    return %arg0, %c0_i32, %c0_i32_0 : i32, i32, i32
  }
}

</mosaic_0001>

<bundles_post_ra>
// kernel: conv_ffn_forward.1
= control target key start
LH: loop header
LB: loop body
LE: loop exit
PB: predicated region body
PF: predicated region fallthrough
CT: control target
= control target key end

     0   :  { %s1230_s13 = smov 0   ;;  %s1718_s0 = inlined_call_operand.vmem [shape: f32[2,4,256], index: 0, kind: input, shape index: {}]   ;;  %s1719_s1 = inlined_call_operand.vmem [shape: f32[9,256], index: 1, kind: input, shape index: {}]   ;;  %s1720_s2 = inlined_call_operand.vmem [shape: f32[16,36], index: 2, kind: input, shape index: {}]   ;;  %s1721_s3 = inlined_call_operand.vmem [shape: f32[16,1], index: 3, kind: input, shape index: {}]   ;;  %s1722_s4 = inlined_call_operand.vmem [shape: f32[16,1], index: 4, kind: input, shape index: {}]   ;;  %s1723_s5 = inlined_call_operand.vmem [shape: f32[16,144], index: 5, kind: input, shape index: {}]   ;;  %s1724_s6 = inlined_call_operand.vmem [shape: f32[16,1], index: 6, kind: input, shape index: {}]   ;;  %s1725_s7 = inlined_call_operand.vmem [shape: f32[16,1], index: 7, kind: input, shape index: {}]   ;;  %s1726_s8 = inlined_call_operand.vmem [shape: f32[4,16], index: 8, kind: input, shape index: {}]   ;;  %s1727_s9 = inlined_call_operand.vmem [shape: f32[4,1], index: 9, kind: input, shape index: {}]   ;;  %s1728_s10 = inlined_call_operand.vmem [shape: f32[2,4,256], index: 10, kind: output, shape index: {}]  }
   0x1 LB: > { %s1111_s14 = sadd.s32 4294967295, %s1164_s13   ;;  %p1115_p0 = scmp.ge.s32.totalorder %s1164_s13, 1  ;;  %s1164_s13 = sphi %s1230_s13, %s20_s13  }
   0x2   : > { %p312_p1 = scmp.lt.s32.totalorder %s1164_s13, 3 }
   0x4   : > { %p313_p2 = pnand %p1115_p0, %p312_p1 }
   0x5   : > { %p350_p3 = scmp.lt.s32.totalorder (!%p313_p2), %s1111_s14, 1  ;;  %s1166_s19 = smov (!%p313_p2), 16  }
   0x6   : > { %316 = sbr.rel (%p313_p2) target bundleno = 895 (0x37f), region = 60  ;;  %s1167_s20 = smov (!%p313_p2), 15  }
   0x7   : > { %s1168_s21 = smov (!%p313_p2), 1   ;;  %s1169_s22 = smov (!%p313_p2), 127  }
   0x8   : > { %s1170_s23 = smov (!%p313_p2), 113   ;;  %s1171_s24 = smov (!%p313_p2), 112  }
   0x9   : > { %s1172_s25 = smov (!%p313_p2), 111   ;;  %s1173_s26 = smov (!%p313_p2), 17  }
   0xb   : > { %s1730_s14 = smov (!%p350_p3, %s1111_s14), 1  ;;  %v1302_v26 = vld [vmem:[%s1719_s1 + $0x8] sm:$0xff]  ;;  %v1310_v28 = vld [vmem:[%s1719_s1] sm:$0xff]  ;;  %vm461_vm0 = vcmask 1043456   ;;  %v1174_v47 = vmov 0   ;;  %vm535_vm1 = vcmask 908288  }
   0xc   : > { %s1134_s15 = sshll.u32 %s1730_s14, 3  ;;  %v1305_v27 = vperm.slane %v1302_v26, 4  ;;  %v1313_v29 = vperm.slane %v1310_v28, 4  ;;  %1154 = vset.pattern.permute.xlu1 %v1174_v47  ;;  %v367_v48 = vld [vmem:[%s1721_s3] sm:$0xff]  ;;  %1153 = vset.pattern.permute.xlu0 %v1174_v47  ;;  %v1337_v50 = vld [vmem:[%s1719_s1 + $0x18] ss:$0 sm:$0xff] }
   0xd   : > { %s354_s18 = scalar_lea.vmem %s1718_s0, %s1134_s15  ;;  %1155 = vset.pattern.permute.xlu2 %v1174_v47  ;;  %v369_v52 = vld [vmem:[%s1722_s4] sm:$0xff]  ;;  %vm472_vm2 = vcmask 1039360   ;;  %vm447_vm3 = vcmask 7168   ;;  %v1346_v56 = vperm.slane %v1302_v26, 5  ;;  %v1351_v58 = vperm.slane %v1302_v26, 3  ;;  %v368_v60 = vld [vmem:[%s1721_s3 + $0x8] sm:$0xff] }
   0xe   : > { %v1246_v0 = vld [vmem:[%s354_s18] sm:$0xff]  ;;  %v460_v30 = vrot.slane %v1305_v27, 4  ;;  %vm493_vm4 = vcmask 924672   ;;  %vm514_vm5 = vcmask 916480   ;;  %v1354_v59 = vperm.slane %v1302_v26, 7  ;;  %v370_v61 = vld [vmem:[%s1722_s4 + $0x8] sm:$0xff] }
   0xf   : > { %372 = vst [vmem:[#allocation1] ss:$2 sm:$0xff] %v1246_v0  ;;  %vm426_vm6 = vcmask 121856   ;;  %vm405_vm7 = vcmask 130048   ;;  %vm384_vm8 = vcmask 138240   ;;  %vm587_vm9 = vcmask 293888  }
  0x10   : > { %v462_v33 = vsel %vm461_vm0, %v1313_v29, %v460_v30  ;;  %v1399_v30 = vperm.slane %v1310_v28, 6 }
  0x11   : > { %v464_v34 = vmul.f32 %v462_v33, %v1246_v0  ;;  %v1405_v33 = vperm.slane %v1302_v26, 1 }
  0x16   : > { %v1249_v1 = vld.sshfl [vmem:[#allocation1 + $0x8] sm:$0xff pattern:$0x75316420] }
  0x17   : > { %377 = vst [vmem:[#allocation1] ss:$2 sm:$0xff] %v1246_v0 }
  0x1e   : > { %v1252_v2 = vld.sshfl [vmem:[#allocation1] sm:$0xff pattern:$0x75316420]  ;;  %v1254_v3 = vld.sshfl [vmem:[#allocation1 + $0x8] sm:$0xff pattern:$0x75316420] }
  0x1f   : > { %393 = vst [vmem:[#allocation1] ss:$2 sm:$0xff] %v1246_v0 }
  0x26   : > { %v394_v4 = vld.sshfl [vmem:[#allocation1 + $0x8] sm:$0xff pattern:$0x75316420] }
  0x27   : > { %395 = vrot.lane.b32.xlu0 %v394_v4, %s1166_s19  ;;  %398 = vst [vmem:[#allocation1] ss:$2 sm:$0xff] %v1246_v0  ;;  %v1369_v4 = vperm.slane %v1310_v28, 7 }
  0x2e   : > { %v399_v5 = vld.sshfl [vmem:[#allocation1] sm:$0xff pattern:$0x75316420]  ;;  %v400_v6 = vld.sshfl [vmem:[#allocation1 + $0x8] sm:$0xff pattern:$0x75316420] }
  0x2f   : > { %401 = vrot.lane.b32.xlu1 %v399_v5, %s1166_s19  ;;  %414 = vst [vmem:[#allocation1] ss:$2 sm:$0xff] %v1246_v0  ;;  %403 = vrot.lane.b32.xlu2 %v400_v6, %s1166_s19  ;;  %v1373_v6 = vperm.slane %v1302_v26, 2 }
  0x36   : > { %v415_v7 = vld.sshfl [vmem:[#allocation1 + $0x8] sm:$0xff pattern:$0x75316420] }
  0x37   : > { %416 = vrot.lane.b32.xlu0 %v415_v7, %s1167_s20  ;;  %419 = vst [vmem:[#allocation1] ss:$2 sm:$0xff] %v1246_v0 }
  0x3e   : > { %v420_v8 = vld.sshfl [vmem:[#allocation1] sm:$0xff pattern:$0x75316420]  ;;  %v421_v9 = vld.sshfl [vmem:[#allocation1 + $0x8] sm:$0xff pattern:$0x75316420] }
  0x3f   : > { %422 = vrot.lane.b32.xlu1 %v420_v8, %s1167_s20  ;;  %435 = vst [vmem:[#allocation1] ss:$2 sm:$0xff] %v1246_v0  ;;  %424 = vrot.lane.b32.xlu2 %v421_v9, %s1167_s20 }
  0x46   : > { %v436_v10 = vld.sshfl [vmem:[#allocation1 + $0x8] sm:$0xff pattern:$0x75316420] }
  0x47   : > { %437 = vrot.lane.b32.xlu0 %v436_v10, %s1168_s21  ;;  %440 = vst [vmem:[#allocation1] ss:$2 sm:$0xff] %v1246_v0 }
  0x4e   : > { %v441_v11 = vld.sshfl [vmem:[#allocation1] sm:$0xff pattern:$0x75316420]  ;;  %v442_v12 = vld.sshfl [vmem:[#allocation1 + $0x8] sm:$0xff pattern:$0x75316420] }
  0x4f   : > { %443 = vrot.lane.b32.xlu1 %v441_v11, %s1168_s21  ;;  %465 = vst [vmem:[#allocation1] ss:$2 sm:$0xff] %v1246_v0  ;;  %445 = vrot.lane.b32.xlu2 %v442_v12, %s1168_s21  ;;  %v1381_v11 = vperm.slane %v1310_v28, 5 }
  0x56   : > { %v466_v13 = vld.sshfl [vmem:[#allocation1] sm:$0xff pattern:$0x75316420]  ;;  %v467_v14 = vld.sshfl [vmem:[#allocation1 + $0x8] sm:$0xff pattern:$0x75316420] }
  0x57   : > { %468 = vrot.lane.b32.xlu0 %v466_v13, %s1169_s22  ;;  %470 = vrot.lane.b32.xlu1 %v467_v14, %s1169_s22  ;;  %476 = vst [vmem:[#allocation1] ss:$2 sm:$0xff] %v1246_v0 }
  0x5e   : > { %v477_v15 = vld.sshfl [vmem:[#allocation1] sm:$0xff pattern:$0x75316420] }
  0x5f   : > { %486 = vst [vmem:[#allocation1] ss:$2 sm:$0xff] %v1246_v0  ;;  %478 = vrot.lane.b32.xlu2 %v477_v15, %s1169_s22 }
  0x66   : > { %v487_v16 = vld.sshfl [vmem:[#allocation1] sm:$0xff pattern:$0x75316420]  ;;  %v488_v17 = vld.sshfl [vmem:[#allocation1 + $0x8] sm:$0xff pattern:$0x75316420] }
  0x67   : > { %489 = vrot.lane.b32.xlu0 %v487_v16, %s1170_s23  ;;  %491 = vrot.lane.b32.xlu1 %v488_v17, %s1170_s23  ;;  %497 = vst [vmem:[#allocation1] ss:$2 sm:$0xff] %v1246_v0  ;;  %v1386_v16 = vperm.slane %v1310_v28, 3 }
  0x6e   : > { %v498_v18 = vld.sshfl [vmem:[#allocation1] sm:$0xff pattern:$0x75316420] }
  0x6f   : > { %507 = vst [vmem:[#allocation1] ss:$2 sm:$0xff] %v1246_v0  ;;  %499 = vrot.lane.b32.xlu2 %v498_v18, %s1170_s23 }
  0x76   : > { %v508_v19 = vld.sshfl [vmem:[#allocation1] sm:$0xff pattern:$0x75316420]  ;;  %v509_v20 = vld.sshfl [vmem:[#allocation1 + $0x8] sm:$0xff pattern:$0x75316420] }
  0x77   : > { %510 = vrot.lane.b32.xlu0 %v508_v19, %s1171_s24  ;;  %518 = vst [vmem:[#allocation1] ss:$2 sm:$0xff] %v1246_v0 }
  0x7e   : > { %v519_v21 = vld.sshfl [vmem:[#allocation1] sm:$0xff pattern:$0x75316420] }
  0x7f   : > { %512 = vrot.lane.b32.xlu0 %v509_v20, %s1171_s24  ;;  %520 = vrot.lane.b32.xlu1 %v519_v21, %s1171_s24  ;;  %528 = vst [vmem:[#allocation1] ss:$2 sm:$0xff] %v1246_v0 }
  0x86   : > { %v529_v22 = vld.sshfl [vmem:[#allocation1] sm:$0xff pattern:$0x75316420]  ;;  %v530_v23 = vld.sshfl [vmem:[#allocation1 + $0x8] sm:$0xff pattern:$0x75316420] }
  0x87   : > { %531 = vrot.lane.b32.xlu1 %v529_v22, %s1172_s25  ;;  %374 = vrot.lane.b32.xlu0 %v1249_v1, %s1173_s26  ;;  %539 = vst [vmem:[#allocation1] ss:$2 sm:$0xff] %v1246_v0  ;;  %v1365_v0 = vperm.slane %v1302_v26, 6 }
  0x88   : > { %533 = vrot.lane.b32.xlu2 %v530_v23, %s1172_s25  ;;  %v1395_v23 = vld [vmem:[%s1719_s1 + $0x10] ss:$0 sm:$0xff] }
  0x89   : > { %v1297_v25 = vpop.permute.xlu2 %403 }
  0x8e   : > { %v540_v24 = vld.sshfl [vmem:[#allocation1] sm:$0xff pattern:$0x75316420] }
  0x8f   : > { %380 = vrot.lane.b32.xlu1 %v1252_v2, %s1173_s26  ;;  %562 = vst [vmem:[#allocation1] ss:$2 sm:$0xff] %v464_v34  ;;  %653 = vperm.xlu0 %1153, %v368_v60  }
  0x90   : > { %541 = vrot.lane.b32.xlu2 %v540_v24, %s1172_s25 }
  0x96   : > { %v564_v18 = vld.sshfl [vmem:[#allocation1 + $0x8] sm:$0xff pattern:$0x75316420] }
  0x97   : > { %648 = vperm.xlu1 %1154, %v367_v48  }
  0x98   : > { %382 = vrot.lane.b32.xlu2 %v1254_v3, %s1173_s26 }
  0x99   : > { %v1316_v31 = vpop.permute.xlu0 %395  ;;  %v425_v32 = vpop.permute.xlu2 %424 }
  0x9f   : > { %662 = vperm.xlu1 %1154, %v369_v52   ;;  %v563_v52 = vld.sshfl [vmem:[#allocation1] sm:$0xff pattern:$0x75316420] }
  0xa0   : > { %667 = vperm.xlu2 %1155, %v370_v61  }
  0xa1   : > { %v1321_v35 = vpop.permute.xlu1 %401 }
  0xa9   : > { %v1323_v36 = vpop.permute.xlu0 %416  ;;  %v446_v37 = vpop.permute.xlu2 %445 }
  0xb1   : > { %v1325_v38 = vpop.permute.xlu1 %422 }
  0xb2   : > { %v427_v10 = vsel %vm426_vm6, %v1325_v38, %v425_v32  ;;  %v1402_v32 = vperm.slane %v1310_v28, 1 }
  0xb3   : > { %v434_v19 = vmul.f32 %v1373_v6, %v427_v10 }
  0xb9   : > { %v438_v39 = vpop.permute.xlu0 %437  ;;  %v479_v40 = vpop.permute.xlu2 %478 }
  0xc1   : > { %v444_v41 = vpop.permute.xlu1 %443 }
  0xc2   : > { %v448_v62 = vsel %vm447_vm3, %v444_v41, %v446_v37  ;;  %v451_v20 = vsel %vm447_vm3, %v438_v39, %v444_v41 }
  0xc3   : > { %v455_v7 = vmul.f32 %v1351_v58, %v448_v62  ;;  %v454_v41 = vmul.f32 %v1386_v16, %v451_v20 }
  0xc5   : > { %v558_v21 = vrot.slane %v455_v7, 4 }
  0xc7   : > { %v582_v47 = vsel %vm461_vm0, %v434_v19, %v558_v21 }
  0xc9   : > { %v469_v42 = vpop.permute.xlu0 %468  ;;  %v500_v43 = vpop.permute.xlu2 %499 }
  0xca   : > { %v471_v44 = vpop.permute.xlu1 %470 }
  0xcb   : > { %v481_v57 = vsel %vm472_vm2, %v471_v44, %v479_v40  ;;  %v473_v12 = vsel %vm472_vm2, %v469_v42, %v471_v44  ;;  %v1411_v40 = vperm.slane %v1310_v28, 2  ;;  %v409_v44 = vsel %vm405_vm7, %v1316_v31, %v1321_v35 }
  0xcc   : > { %v485_v63 = vmul.f32 %v1346_v56, %v481_v57  ;;  %v484_v24 = vmul.f32 %v1381_v11, %v473_v12  ;;  %v412_v31 = vmul.f32 %v1402_v32, %v409_v44 }
  0xce   : > { %v570_v13 = vrot.slane %v485_v63, 4 }
  0xd0   : > { %v584_v39 = vsel %vm461_vm0, %v564_v18, %v570_v13 }
  0xd9   : > { %v1327_v45 = vpop.permute.xlu0 %489  ;;  %v492_v49 = vpop.permute.xlu1 %491 }
  0xda   : > { %v502_v3 = vsel %vm493_vm4, %v492_v49, %v500_v43  ;;  %v494_v34 = vsel %vm493_vm4, %v1327_v45, %v492_v49  ;;  %v430_v45 = vsel %vm426_vm6, %v1323_v36, %v1325_v38  ;;  %v406_v49 = vsel %vm405_vm7, %v1321_v35, %v1297_v25 }
  0xdb   : > { %v506_v14 = vmul.f32 %v1365_v0, %v502_v3  ;;  %v557_v36 = vrot.slane %v454_v41, 4  ;;  %v1434_v25 = vperm.slane %v1310_v28, 0  ;;  %v1437_v35 = vperm.slane %v1302_v26, 0  ;;  %v365_v26 = vld [vmem:[%s1720_s2] sm:$0xff] }
  0xe2   : > { %v1329_v46 = vpop.permute.xlu2 %533 }
  0xe9   : > { %v511_v51 = vpop.permute.xlu0 %510 }
  0xea   : > { %v542_v53 = vpop.permute.xlu2 %541 }
  0xeb   : > { %v544_v54 = vsel %vm535_vm1, %v1329_v46, %v542_v53  ;;  %v433_v53 = vmul.f32 %v1411_v40, %v430_v45 }
  0xec   : > { %v548_v55 = vmul.f32 %v1337_v50, %v544_v54  ;;  %v413_v54 = vmul.f32 %v1405_v33, %v406_v49  ;;  %v682_v49 = vld [vmem:[%s1724_s6] sm:$0xff] }
  0xee   : > { %1123 = vmatpush.msk.msra.mxu1 %vm461_vm0, %v548_v55  ;;  %v552_v3 = vrot.slane %v413_v54, 4 }
  0xf1   : > { %v513_v1 = vpop.permute.xlu0 %512  ;;  %v521_v2 = vpop.permute.xlu1 %520 }
  0xf2   : > { %v523_v5 = vsel %vm514_vm5, %v513_v1, %v521_v2  ;;  %v515_v8 = vsel %vm514_vm5, %v511_v51, %v513_v1  ;;  %v569_v51 = vrot.slane %v484_v24, 4  ;;  %v383_v57 = vpop.permute.xlu2 %382  ;;  %v581_v1 = vsel %vm461_vm0, %v433_v53, %v557_v36 }
  0xf3   : > { %v527_v9 = vmul.f32 %v1354_v59, %v523_v5  ;;  %v526_v17 = vmul.f32 %v1369_v4, %v515_v8  ;;  %v551_v2 = vrot.slane %v412_v31, 4 }
  0xf4   : > { %v583_v60 = vsel %vm461_vm0, %v563_v52, %v569_v51  ;;  %v684_v51 = vld [vmem:[%s1725_s7] sm:$0xff] }
  0xf5   : > { %v576_v15 = vrot.slane %v527_v9, 4  ;;  %v575_v42 = vrot.slane %v526_v17, 4  ;;  %v366_v9 = vld [vmem:[%s1720_s2 + $0x8] sm:$0xff]  ;;  %v1001_v52 = vld [vmem:[%s1727_s9] sm:$0xf] }
  0xf7   : > { %v586_v22 = vsel %vm461_vm0, %v506_v14, %v576_v15 }
  0xf8   : > { %635 = vmatpush.msra.mxu1 %v586_v22 }
  0xf9   : > { %v532_v37 = vpop.permute.xlu1 %531  ;;  %v375_v55 = vpop.permute.xlu0 %374 }
  0xfa   : > { %v536_v43 = vsel %vm535_vm1, %v532_v37, %v1329_v46  ;;  %636 = vmatpush.msra.mxu1 %v584_v39  ;;  %v505_v46 = vmul.f32 %v1399_v30, %v494_v34  ;;  %v668_v20 = vpop.permute.xlu2 %667 }
  0xfb   : > { %v547_v48 = vmul.f32 %v1395_v23, %v536_v43 }
  0xfc   : > { %637 = vmatpush.msra.mxu1 %v582_v47  ;;  %v585_v38 = vsel %vm461_vm0, %v505_v46, %v575_v42  ;;  %v683_v47 = vld [vmem:[%s1724_s6 + $0x8] sm:$0xff] }
  0xfd   : > { %1120 = vmatpush.msk.msra.mxu0 %vm461_vm0, %v547_v48  ;;  %v685_v48 = vld [vmem:[%s1725_s7 + $0x8] sm:$0xff] }
  0xff   : > { %612 = vmatpush.msra.mxu0 %v585_v38 }
 0x101   : > { %v381_v61 = vpop.permute.xlu1 %380  ;;  %613 = vmatpush.msra.mxu0 %v583_v60  ;;  %v654_v18 = vpop.permute.xlu0 %653 }
 0x102   : > { %v388_v62 = vsel %vm384_vm8, %v375_v55, %v381_v61  ;;  %v385_v63 = vsel %vm384_vm8, %v381_v61, %v383_v57 }
 0x103   : > { %v391_v5 = vmul.f32 %v1434_v25, %v388_v62  ;;  %v392_v28 = vmul.f32 %v1437_v35, %v385_v63  ;;  %614 = vmatpush.msra.mxu0 %v581_v1 }
 0x105   : > { %v579_v7 = vsel %vm461_vm0, %v391_v5, %v551_v2  ;;  %v580_v8 = vsel %vm461_vm0, %v392_v28, %v552_v3 }
 0x106   : > { %615 = vmatpush.msra.mxu0 %v579_v7  ;;  %638 = vmatpush.msra.mxu1 %v580_v8 }
 0x107   : > { %1121 = vmatmul.msk.f32.vlgmr.msra.gmra.mxu0 %vm587_vm9, %v365_v26  ;;  %1124 = vmatmul.msk.f32.vlgmr.msra.gmra.mxu1 %vm587_vm9, %v365_v26 }
 0x109   : > { %v649_v10 = vpop.permute.xlu1 %648 }
 0x10f   : > { %1122 = vmatmul.msk.f32.gmra.mxu0 %vm587_vm9, %v366_v9  ;;  %1125 = vmatmul.msk.f32.gmra.mxu1 %vm587_vm9, %v366_v9 }
 0x111   : > { %v663_v14 = vpop.permute.xlu1 %662 }
 0x184   : > { %v617_v12 = vpop.f32.mrf.mxu0  ;;  %v640_v22 = vpop.f32.mrf.mxu1 }
 0x185   : > { %v656_v13 = vmul.f32 %v649_v10, %v617_v12  ;;  %v657_v37 = vmul.f32 %v649_v10, %v640_v22 }
 0x187   : > { %v670_v15 = vadd.f32 %v663_v14, %v656_v13  ;;  %v671_v39 = vadd.f32 %v663_v14, %v657_v37 }
 0x189   : > { %v1453_v17 = vmax.f32 %v670_v15, 0.0  ;;  %v1469_v41 = vmax.f32 %v671_v39, 0.0 }
 0x18b   : > { %782 = vrot.lane.b32.xlu0 %v1453_v17, %s1169_s22  ;;  %804 = vrot.lane.b32.xlu2 %v1453_v17, %s1170_s23 }
 0x18c   : > { %826 = vrot.lane.b32.xlu1 %v1453_v17, %s1171_s24  ;;  %v620_v19 = vpop.f32.mrf.mxu0  ;;  %v643_v42 = vpop.f32.mrf.mxu1 }
 0x18d   : > { %v658_v21 = vmul.f32 %v654_v18, %v620_v19  ;;  %v659_v43 = vmul.f32 %v654_v18, %v643_v42 }
 0x18f   : > { %v672_v24 = vadd.f32 %v668_v20, %v658_v21  ;;  %v673_v44 = vadd.f32 %v668_v20, %v659_v43 }
 0x191   : > { %v1461_v34 = vmax.f32 %v672_v24, 0.0  ;;  %v1489_v45 = vmax.f32 %v673_v44, 0.0 }
 0x193   : > { %848 = vrot.lane.b32.xlu0 %v1453_v17, %s1172_s25  ;;  %762 = vrot.lane.b32.xlu2 %v1453_v17, %s1168_s21  ;;  %v780_v44 = vmul.f32 %v1461_v34, %v1313_v29 }
 0x194   : > { %786 = vrot.lane.b32.xlu1 %v1461_v34, %s1169_s22 }
 0x19b   : > { %740 = vrot.lane.b32.xlu2 %v1453_v17, %s1167_s20  ;;  %808 = vrot.lane.b32.xlu0 %v1461_v34, %s1170_s23 }
 0x19c   : > { %784 = vrot.lane.b32.xlu1 %v1469_v41, %s1169_s22 }
 0x1a3   : > { %806 = vrot.lane.b32.xlu0 %v1469_v41, %s1170_s23  ;;  %830 = vrot.lane.b32.xlu2 %v1461_v34, %s1171_s24 }
 0x1a4   : > { %756 = vrot.lane.b32.xlu1 %v1469_v41, %s1168_s21 }
 0x1ab   : > { %764 = vrot.lane.b32.xlu0 %v1461_v34, %s1168_s21  ;;  %828 = vrot.lane.b32.xlu2 %v1469_v41, %s1171_s24 }
 0x1ac   : > { %742 = vrot.lane.b32.xlu1 %v1461_v34, %s1167_s20 }
 0x1b3   : > { %832 = vrot.lane.b32.xlu0 %v1489_v45, %s1171_s24  ;;  %852 = vrot.lane.b32.xlu2 %v1461_v34, %s1172_s25 }
 0x1b4   : > { %734 = vrot.lane.b32.xlu1 %v1469_v41, %s1167_s20 }
 0x1bb   : > { %720 = vrot.lane.b32.xlu0 %v1461_v34, %s1166_s19  ;;  %718 = vrot.lane.b32.xlu2 %v1453_v17, %s1166_s19 }
 0x1bc   : > { %810 = vrot.lane.b32.xlu1 %v1489_v45, %s1170_s23 }
 0x1c3   : > { %736 = vrot.lane.b32.xlu0 %v1489_v45, %s1167_s20  ;;  %788 = vrot.lane.b32.xlu2 %v1489_v45, %s1169_s22 }
 0x1c4   : > { %850 = vrot.lane.b32.xlu1 %v1469_v41, %s1172_s25 }
 0x1cb   : > { %854 = vrot.lane.b32.xlu0 %v1489_v45, %s1172_s25  ;;  %758 = vrot.lane.b32.xlu2 %v1489_v45, %s1168_s21 }
 0x1cc   : > { %712 = vrot.lane.b32.xlu1 %v1469_v41, %s1166_s19 }
 0x1d3   : > { %690 = vrot.lane.b32.xlu0 %v1489_v45, %s1173_s26  ;;  %714 = vrot.lane.b32.xlu2 %v1489_v45, %s1166_s19  ;;  %s359_s19 = scalar_lea.vmem %s1728_s10, %s1134_s15 }
 0x1d4   : > { %698 = vrot.lane.b32.xlu1 %v1461_v34, %s1173_s26 }
 0x1db   : > { %696 = vrot.lane.b32.xlu0 %v1453_v17, %s1173_s26  ;;  %688 = vrot.lane.b32.xlu2 %v1469_v41, %s1173_s26 }
 0x1dc   : > { %975 = vperm.xlu1 %1154, %v683_v47  }
 0x1e3   : > { %989 = vperm.xlu0 %1153, %v685_v48   ;;  %970 = vperm.xlu2 %1155, %v682_v49   ;;  %v778_v48 = vmul.f32 %v1453_v17, %v1313_v29 }
 0x1e4   : > { %984 = vperm.xlu1 %1154, %v684_v51  }
 0x1e5   : > { %v1537_v46 = vpop.permute.xlu2 %804 }
 0x1eb   : > { %1004 = vperm.xlu2 %1155, %v1001_v52  }
 0x1ed   : > { %v1542_v31 = vpop.permute.xlu2 %762 }
 0x1f5   : > { %v1544_v53 = vpop.permute.xlu2 %740 }
 0x1fd   : > { %v1546_v36 = vpop.permute.xlu0 %782  ;;  %v831_v54 = vpop.permute.xlu2 %830 }
 0x1fe   : > { %v827_v38 = vpop.permute.xlu1 %826 }
 0x205   : > { %v849_v55 = vpop.permute.xlu0 %848  ;;  %v829_v60 = vpop.permute.xlu2 %828 }
 0x206   : > { %v1548_v57 = vpop.permute.xlu1 %786  ;;  %v834_v7 = vsel %vm514_vm5, %v827_v38, %v829_v60 }
 0x207   : > { %v844_v12 = vmul.f32 %v834_v7, %v1369_v4 }
 0x20d   : > { %v1550_v61 = vpop.permute.xlu0 %808  ;;  %v853_v1 = vpop.permute.xlu2 %852 }
 0x20e   : > { %v1552_v62 = vpop.permute.xlu1 %784 }
 0x20f   : > { %v790_v22 = vsel %vm472_vm2, %v1546_v36, %v1552_v62 }
 0x210   : > { %v800_v43 = vmul.f32 %v790_v22, %v1381_v11 }
 0x215   : > { %v1554_v63 = vpop.permute.xlu0 %806  ;;  %v1562_v28 = vpop.permute.xlu2 %718 }
 0x216   : > { %v1556_v2 = vpop.permute.xlu1 %756  ;;  %v812_v18 = vsel %vm493_vm4, %v1537_v46, %v1554_v63 }
 0x217   : > { %v772_v47 = vsel %vm447_vm3, %v1556_v2, %v1542_v31 }
 0x218   : > { %v774_v51 = vmul.f32 %v772_v47, %v1386_v16 }
 0x21d   : > { %v1558_v3 = vpop.permute.xlu0 %764  ;;  %v1570_v13 = vpop.permute.xlu2 %788 }
 0x21e   : > { %v1560_v5 = vpop.permute.xlu1 %742  ;;  %v791_v21 = vsel %vm472_vm2, %v1548_v57, %v1570_v13 }
 0x21f   : > { %v802_v37 = vmul.f32 %v791_v21, %v1381_v11 }
 0x225   : > { %v833_v26 = vpop.permute.xlu0 %832  ;;  %v1587_v24 = vpop.permute.xlu2 %758 }
 0x226   : > { %v1565_v8 = vpop.permute.xlu1 %734  ;;  %v835_v9 = vsel %vm514_vm5, %v831_v54, %v833_v26 }
 0x227   : > { %v846_v10 = vmul.f32 %v835_v9, %v1369_v4  ;;  %v822_v4 = vmul.f32 %v812_v18, %v1399_v30  ;;  %v843_v18 = vsel %vm514_vm5, %v833_v26, %v831_v54 }
 0x228   : > { %v847_v26 = vmul.f32 %v843_v18, %v1354_v59 }
 0x229   : > { %876 = vmatpush.msra.mxu2 %v846_v10 }
 0x22b   : > { %877 = vmatpush.msra.mxu2 %v844_v12  ;;  %v750_v12 = vsel %vm426_vm6, %v1565_v8, %v1544_v53 }
 0x22c   : > { %v752_v54 = vmul.f32 %v750_v12, %v1411_v40 }
 0x22d   : > { %v1572_v14 = vpop.permute.xlu0 %720  ;;  %v1608_v52 = vpop.permute.xlu2 %714 }
 0x22e   : > { %v811_v15 = vpop.permute.xlu1 %810  ;;  %v729_v21 = vsel %vm405_vm7, %v1608_v52, %v1572_v14 }
 0x22f   : > { %v813_v19 = vsel %vm493_vm4, %v1550_v61, %v811_v15 }
 0x230   : > { %v824_v20 = vmul.f32 %v813_v19, %v1399_v30  ;;  %v773_v30 = vsel %vm447_vm3, %v1587_v24, %v1558_v3 }
 0x231   : > { %v776_v49 = vmul.f32 %v773_v30, %v1386_v16 }
 0x232   : > { %878 = vmatpush.msra.mxu2 %v824_v20  ;;  %v842_v20 = vsel %vm514_vm5, %v829_v60, %v827_v38  ;;  %v679_v38 = vld [vmem:[%s1723_s5 + $0x8] sm:$0xff]  ;;  %v821_v60 = vsel %vm493_vm4, %v811_v15, %v1550_v61 }
 0x234   : > { %879 = vmatpush.msra.mxu2 %v822_v4 }
 0x235   : > { %v1590_v39 = vpop.permute.xlu0 %736  ;;  %v689_v30 = vpop.permute.xlu2 %688 }
 0x236   : > { %v851_v42 = vpop.permute.xlu1 %850  ;;  %880 = vmatpush.msra.mxu2 %v802_v37  ;;  %v751_v11 = vsel %vm426_vm6, %v1590_v39, %v1560_v5 }
 0x237   : > { %v856_v7 = vsel %vm535_vm1, %v849_v55, %v851_v42  ;;  %v864_v9 = vsel %vm535_vm1, %v851_v42, %v849_v55  ;;  %v754_v55 = vmul.f32 %v751_v11, %v1411_v40  ;;  %v820_v40 = vsel %vm493_vm4, %v1554_v63, %v1537_v46 }
 0x238   : > { %881 = vmatpush.msra.mxu2 %v800_v43  ;;  %v867_v4 = vmul.f32 %v1337_v50, %v864_v9  ;;  %v825_v42 = vmul.f32 %v821_v60, %v1365_v0  ;;  %v823_v63 = vmul.f32 %v820_v40, %v1365_v0  ;;  %v766_v11 = vsel %vm447_vm3, %v1542_v31, %v1556_v2  ;;  %v680_v2 = vld [vmem:[%s1723_s5 + $0x10] sm:$0xff] }
 0x239   : > { %v723_v31 = vsel %vm405_vm7, %v1572_v14, %v1608_v52 }
 0x23a   : > { %882 = vmatpush.msra.mxu2 %v780_v44  ;;  %v798_v44 = vsel %vm472_vm2, %v1552_v62, %v1546_v36  ;;  %v781_v36 = vmul.f32 %v1489_v45, %v1305_v27  ;;  %v767_v62 = vsel %vm447_vm3, %v1558_v3, %v1587_v24  ;;  %v775_v3 = vmul.f32 %v766_v11, %v1351_v58 }
 0x23b   : > { %v777_v45 = vmul.f32 %v767_v62, %v1351_v58 }
 0x23c   : > { %883 = vmatpush.msra.mxu2 %v778_v48 }
 0x23d   : > { %v855_v34 = vpop.permute.xlu0 %854  ;;  %v971_v9 = vpop.permute.xlu2 %970 }
 0x23e   : > { %v1612_v10 = vpop.permute.xlu1 %712  ;;  %v865_v29 = vsel %vm535_vm1, %v855_v34, %v853_v1  ;;  %884 = vmatpush.msra.mxu2 %v776_v49  ;;  %v857_v17 = vsel %vm535_vm1, %v853_v1, %v855_v34  ;;  %v866_v1 = vmul.f32 %v1395_v23, %v856_v7  ;;  %v779_v49 = vmul.f32 %v1469_v41, %v1305_v27 }
 0x23f   : > { %v868_v16 = vmul.f32 %v1395_v23, %v857_v17  ;;  %v869_v19 = vmul.f32 %v1337_v50, %v865_v29  ;;  %v728_v22 = vsel %vm405_vm7, %v1612_v10, %v1562_v28  ;;  %v732_v50 = vmul.f32 %v729_v21, %v1402_v32 }
 0x240   : > { %885 = vmatpush.msra.mxu2 %v774_v51  ;;  %v845_v23 = vmul.f32 %v842_v20, %v1354_v59  ;;  %v730_v15 = vmul.f32 %v728_v22, %v1402_v32  ;;  %v799_v59 = vsel %vm472_vm2, %v1570_v13, %v1548_v57  ;;  %v681_v57 = vld [vmem:[%s1723_s5 + $0x18] sm:$0xff]  ;;  %v801_v13 = vmul.f32 %v798_v44, %v1346_v56 }
 0x241   : > { %913 = vmatpush.msra.mxu3 %v868_v16  ;;  %959 = vmatpush.msrb.mxu0 %v869_v19  ;;  %v803_v32 = vmul.f32 %v799_v59, %v1346_v56  ;;  %v678_v56 = vld [vmem:[%s1723_s5] sm:$0xff]  ;;  %v744_v27 = vsel %vm426_vm6, %v1544_v53, %v1565_v8  ;;  %v722_v58 = vsel %vm405_vm7, %v1562_v28, %v1612_v10 }
 0x242   : > { %886 = vmatpush.msra.mxu2 %v754_v55  ;;  %v733_v53 = vmul.f32 %v723_v31, %v1405_v33  ;;  %v731_v14 = vmul.f32 %v722_v58, %v1405_v33 }
 0x243   : > { %914 = vmatpush.msra.mxu3 %v866_v1  ;;  %960 = vmatpush.msrb.mxu0 %v867_v4  ;;  %v1000_v1 = vld [vmem:[%s1726_s8] sm:$0xf] }
 0x244   : > { %887 = vmatpush.msra.mxu2 %v752_v54  ;;  %1126 = vmatmul.msk.f32.vlgmr.msra.gmra.mxu3 %vm405_vm7, %v679_v38 }
 0x245   : > { %922 = vmatpush.msrb.mxu3 %v847_v26  ;;  %v691_v37 = vpop.permute.xlu0 %690  ;;  %1128 = vmatmul.msk.f32.vlgmr.msrb.gmra.mxu0 %vm405_vm7, %v679_v38 }
 0x246   : > { %v699_v61 = vpop.permute.xlu1 %698  ;;  %888 = vmatpush.msra.mxu2 %v732_v50 }
 0x247   : > { %923 = vmatpush.msrb.mxu3 %v845_v23  ;;  %v707_v43 = vsel %vm384_vm8, %v691_v37, %v699_v61  ;;  %v701_v8 = vsel %vm384_vm8, %v699_v61, %v691_v37 }
 0x248   : > { %889 = vmatpush.msra.mxu2 %v730_v15  ;;  %v710_v46 = vmul.f32 %v707_v43, %v1434_v25  ;;  %v1005_v15 = vpop.permute.xlu2 %1004 }
 0x249   : > { %924 = vmatpush.msrb.mxu3 %v825_v42 }
 0x24a   : > { %890 = vmatpush.msra.mxu2 %v710_v46 }
 0x24b   : > { %925 = vmatpush.msrb.mxu3 %v823_v63 }
 0x24c   : > { %1127 = vmatmul.msk.f32.gmra.mxu3 %vm405_vm7, %v681_v57 }
 0x24d   : > { %926 = vmatpush.msrb.mxu3 %v803_v32  ;;  %v697_v47 = vpop.permute.xlu0 %696  ;;  %1129 = vmatmul.msk.f32.gmra.mxu0 %vm405_vm7, %v681_v57 }
 0x24e   : > { %v706_v0 = vsel %vm384_vm8, %v689_v30, %v697_v47  ;;  %v700_v24 = vsel %vm384_vm8, %v697_v47, %v689_v30  ;;  %v976_v51 = vpop.permute.xlu1 %975 }
 0x24f   : > { %927 = vmatpush.msrb.mxu3 %v801_v13  ;;  %v708_v48 = vmul.f32 %v706_v0, %v1434_v25  ;;  %v745_v25 = vsel %vm426_vm6, %v1560_v5, %v1590_v39  ;;  %v753_v5 = vmul.f32 %v744_v27, %v1373_v6  ;;  %v711_v39 = vmul.f32 %v701_v8, %v1437_v35 }
 0x250   : > { %v755_v41 = vmul.f32 %v745_v25, %v1373_v6  ;;  %v709_v6 = vmul.f32 %v700_v24, %v1437_v35 }
 0x251   : > { %928 = vmatpush.msrb.mxu3 %v781_v36  ;;  %891 = vmatpush.msra.mxu2 %v708_v48 }
 0x252   : > { %892 = vmatmul.f32.vlgmr.msra.gmra.mxu2 %v678_v56 }
 0x253   : > { %929 = vmatpush.msrb.mxu3 %v779_v49 }
 0x255   : > { %930 = vmatpush.msrb.mxu3 %v777_v45  ;;  %v990_v18 = vpop.permute.xlu0 %989 }
 0x256   : > { %v985_v12 = vpop.permute.xlu1 %984 }
 0x257   : > { %931 = vmatpush.msrb.mxu3 %v775_v3 }
 0x259   : > { %932 = vmatpush.msrb.mxu3 %v755_v41 }
 0x25a   : > { %895 = vmatmul.f32.gmra.mxu2 %v680_v2 }
 0x25b   : > { %933 = vmatpush.msrb.mxu3 %v753_v5 }
 0x25d   : > { %934 = vmatpush.msrb.mxu3 %v733_v53 }
 0x25f   : > { %935 = vmatpush.msrb.mxu3 %v731_v14 }
 0x261   : > { %936 = vmatpush.msrb.mxu3 %v711_v39 }
 0x263   : > { %937 = vmatpush.msrb.mxu3 %v709_v6 }
 0x264   : > { %938 = vmatmul.f32.vlgmr.msrb.gmra.mxu3 %v678_v56 }
 0x26c   : > { %941 = vmatmul.f32.gmra.mxu3 %v680_v2 }
 0x2c2   : > { %v962_v16 = vpop.f32.mrf.mxu0 }
 0x2c7   : > { %v916_v28 = vpop.f32.mrf.mxu3 }
 0x2ca   : > { %v965_v54 = vpop.f32.mrf.mxu0 }
 0x2cf   : > { %v919_v7 = vpop.f32.mrf.mxu3 }
 0x2d5   : > { %v893_v34 = vpop.f32.mrf.mxu2 }
 0x2d6   : > { %v917_v52 = vadd.f32 %v916_v28, %v893_v34 }
 0x2d8   : > { %v978_v29 = vmul.f32 %v971_v9, %v917_v52 }
 0x2da   : > { %v992_v20 = vadd.f32 %v985_v12, %v978_v29 }
 0x2dc   : > { %v996_v21 = vmax.f32 %v992_v20, 0.0 }
 0x2dd   : > { %v896_v10 = vpop.f32.mrf.mxu2 }
 0x2de   : > { %v920_v33 = vadd.f32 %v919_v7, %v896_v10 }
 0x2e0   : > { %v980_v17 = vmul.f32 %v976_v51, %v920_v33 }
 0x2e2   : > { %v994_v19 = vadd.f32 %v990_v18, %v980_v17 }
 0x2e4   : > { %v998_v55 = vmax.f32 %v994_v19, 0.0 }
 0x2e6   : > { %1024 = vmatpush.msrb.mxu1 %v998_v55 }
 0x2e7   : > { %v939_v35 = vpop.f32.mrf.mxu3 }
 0x2e8   : > { %1025 = vmatpush.msrb.mxu1 %v996_v21  ;;  %v963_v4 = vadd.f32 %v962_v16, %v939_v35 }
 0x2e9   : > { %1130 = vmatmul.msk.f32.vlgmr.msrb.gmra.mxu1 %vm405_vm7, %v1000_v1 }
 0x2ea   : > { %v979_v38 = vmul.f32 %v971_v9, %v963_v4 }
 0x2ec   : > { %v993_v23 = vadd.f32 %v985_v12, %v979_v38 }
 0x2ee   : > { %v997_v37 = vmax.f32 %v993_v23, 0.0 }
 0x2ef   : > { %v942_v26 = vpop.f32.mrf.mxu3 }
 0x2f0   : > { %v966_v60 = vadd.f32 %v965_v54, %v942_v26 }
 0x2f2   : > { %v981_v22 = vmul.f32 %v976_v51, %v966_v60 }
 0x2f4   : > { %v995_v50 = vadd.f32 %v990_v18, %v981_v22 }
 0x2f6   : > { %v999_v40 = vmax.f32 %v995_v50, 0.0 }
 0x2f8   : > { %1044 = vmatpush.msra.mxu1 %v999_v40 }
 0x2fa   : > { %1045 = vmatpush.msra.mxu1 %v997_v37 }
 0x2fb   : > { %1131 = vmatmul.msk.f32.vlgmr.msra.gmra.mxu1 %vm405_vm7, %v1000_v1 }
 0x366   : > { %v1027_v61 = vpop.f32.mrf.mxu1 }
 0x367   : > { %v1028_v43 = vadd.f32 %v1027_v61, %v1005_v15 }
 0x378   : > { %v1047_v42 = vpop.f32.mrf.mxu1 }
 0x379   : > { %v1048_v59 = vadd.f32 %v1047_v42, %v1005_v15 }
 0x37b   : > { %v1052_v46 = vrot.slane %v1048_v59, 4 }
 0x37d   : > { %v1053_v63 = vsel %vm461_vm0, %v1028_v43, %v1052_v46 }
 0x37e   : > { %1055 = vst [vmem:[%s359_s19] sm:$0xff] %v1053_v63 }
 0x37f PF: > { %s20_s13 = sadd.s32 1, %s1164_s13  }
 0x380   : > { %p17_p4 = scmp.ge.s32.totalorder %s20_s13, 4  }
 0x382   :  { %19 = sbr.rel (!%p17_p4) target bundleno = 1 (0x1), region = 90 }

</bundles_post_ra>
